<compile_context>
chip_gen: v6e
topology: v6e:2x2x1
jax: 0.10.0
libtpu: 0.0.40
codegen_flags: <defaults>
</compile_context>

<pallas_src>
import jax
import jax.numpy as jnp
from jax.experimental import pallas as pl
from jax.experimental.pallas import tpu as pltpu

LANE = 128


def _round_up(v, m):
    return (v + m - 1) // m * m


def autoencoder_kernel(x_ref, a1_ref, a2_ref, a3_ref, a4_ref, recon_ref, latent_ref):
    """One batch tile of the full encoder+decoder. a*_ref = [W ; b] (bias = last row)."""

    def affine(h, a_ref):
        k = a_ref.shape[0] - 1            # static split between W rows and bias row
        w = a_ref[:k, :]
        b = a_ref[k:k + 1, :]
        return jnp.dot(h, w, preferred_element_type=jnp.float32) + b

    # Upcast once after load; all elementwise work stays f32, downcast only at store.
    x = x_ref[...].astype(jnp.float32)

    h1 = jnp.maximum(affine(x, a1_ref), 0.0)    # (TB, H)
    z = affine(h1, a2_ref)                      # (TB, LAT_PAD); cols >= latent_dim are exactly 0
    h2 = jnp.maximum(affine(z, a3_ref), 0.0)    # (TB, H)   (zero-padded rows of w3 contribute 0)
    r = affine(h2, a4_ref)                      # (TB, D_PAD); cols >= d are exactly 0

    latent_ref[...] = z.astype(latent_ref.dtype)
    recon_ref[...] = r.astype(recon_ref.dtype)


def _pack(w, b, in_pad, out_pad):
    """Pack [W ; b] into an (in_pad + 1, out_pad) f32 array, zero-padded."""
    w = jnp.asarray(w, jnp.float32)
    b = jnp.asarray(b, jnp.float32).reshape(-1)
    a = jnp.zeros((in_pad + 1, out_pad), jnp.float32)
    a = a.at[: w.shape[0], : w.shape[1]].set(w)
    a = a.at[in_pad, : b.shape[0]].set(b)
    return a


def autoencoder_forward(x, params, *, tile_b_max=2048):
    """x: (B, d). params: dict of (in, out) weights and (1, out) biases.

    Returns (reconstructed (B, d), latent (B, latent_dim)) in x.dtype."""
    B, d = x.shape
    H = params["w1"].shape[1]
    latent_dim = params["w2"].shape[1]

    d_pad = _round_up(max(d, LANE), LANE)   # lane-dense recon block width
    lat_pad = LANE                          # lane-dense latent block width

    # Per-layer packed params (weights zero-padded to the lane-dense widths).
    a1 = _pack(params["w1"], params["b1"], d, H)            # (d+1, H)
    a2 = _pack(params["w2"], params["b2"], H, lat_pad)      # (H+1, 128)
    a3 = _pack(params["w3"], params["b3"], lat_pad, H)      # (129, H)  zero rows >= latent_dim
    a4 = _pack(params["w4"], params["b4"], H, d_pad)        # (H+1, d_pad)

    tile_b = min(tile_b_max, _round_up(B, 8))
    b_pad = _round_up(B, tile_b)
    if b_pad != B:
        x = jnp.pad(x, ((0, b_pad - B), (0, 0)))
    grid = (b_pad // tile_b,)

    out_dtype = x.dtype
    o_item = jnp.dtype(out_dtype).itemsize
    # Double-buffered streaming footprint + resident packed params; cap at v7x-safe 64 MiB.
    stream_bytes = 2 * tile_b * (d * jnp.dtype(x.dtype).itemsize + (d_pad + lat_pad) * o_item)
    param_bytes = sum(int(a.size) * 4 for a in (a1, a2, a3, a4))
    vmem_limit = int(min(64 * 2**20, max(16 * 2**20, 2 * (stream_bytes + param_bytes))))

    def const_spec(a):
        return pl.BlockSpec(a.shape, lambda i: (0, 0))      # resident across the grid

    recon_pad, latent_pad = pl.pallas_call(
        autoencoder_kernel,
        out_shape=(
            jax.ShapeDtypeStruct((b_pad, d_pad), out_dtype),
            jax.ShapeDtypeStruct((b_pad, lat_pad), out_dtype),
        ),
        grid=grid,
        in_specs=[
            pl.BlockSpec((tile_b, d), lambda i: (i, 0)),
            const_spec(a1), const_spec(a2), const_spec(a3), const_spec(a4),
        ],
        out_specs=(
            pl.BlockSpec((tile_b, d_pad), lambda i: (i, 0)),
            pl.BlockSpec((tile_b, lat_pad), lambda i: (i, 0)),
        ),
        compiler_params=pltpu.CompilerParams(
            dimension_semantics=("parallel",),   # shard batch tiles across TCs (v7x)
            vmem_limit_bytes=vmem_limit,
        ),
    )(x, a1, a2, a3, a4)

    return recon_pad[:B, :d], latent_pad[:B, :latent_dim]


def init_params(key, d, latent_dim=2, hidden=10):
    """PyTorch-style uniform(-1/sqrt(fan_in), 1/sqrt(fan_in)) init.

    Weights stored transposed vs. PyTorch: shape (in, out); biases (1, out)."""
    keys = jax.random.split(key, 8)

    def lin(kw, kb, fan_in, fan_out):
        bound = 1.0 / jnp.sqrt(fan_in)
        w = jax.random.uniform(kw, (fan_in, fan_out), jnp.float32, -bound, bound)
        b = jax.random.uniform(kb, (1, fan_out), jnp.float32, -bound, bound)
        return w, b

    w1, b1 = lin(keys[0], keys[1], d, hidden)
    w2, b2 = lin(keys[2], keys[3], hidden, latent_dim)
    w3, b3 = lin(keys[4], keys[5], latent_dim, hidden)
    w4, b4 = lin(keys[6], keys[7], hidden, d)
    return {"w1": w1, "b1": b1, "w2": w2, "b2": b2,
            "w3": w3, "b3": b3, "w4": w4, "b4": b4}


def reference_forward(x, p):
    h1 = jnp.maximum(x @ p["w1"] + p["b1"], 0.0)
    z = h1 @ p["w2"] + p["b2"]
    h2 = jnp.maximum(z @ p["w3"] + p["b3"], 0.0)
    r = h2 @ p["w4"] + p["b4"]
    return r, z


if __name__ == "__main__":
    key = jax.random.PRNGKey(0)
    k_x, k_p, k_x2 = jax.random.split(key, 3)

    B, d, latent_dim = 8, 32, 2
    params = init_params(k_p, d, latent_dim=latent_dim, hidden=10)

    # Small single-tile batch.
    x = jax.random.normal(k_x, (B, d), dtype=jnp.float32)
    recon, latent = autoencoder_forward(x, params)
    recon = jax.block_until_ready(recon)
    latent = jax.block_until_ready(latent)
    recon_ref, latent_ref = reference_forward(x, params)
    assert recon.shape == (B, d) and latent.shape == (B, latent_dim)
    assert jnp.allclose(recon, recon_ref, atol=1e-5, rtol=1e-5)
    assert jnp.allclose(latent, latent_ref, atol=1e-5, rtol=1e-5)

    # Ragged multi-tile batch: exercises the batch grid, row padding and pipelining.
    B2 = 300
    x2 = jax.random.normal(k_x2, (B2, d), dtype=jnp.float32)
    recon2, latent2 = autoencoder_forward(x2, params, tile_b_max=128)
    recon2 = jax.block_until_ready(recon2)
    latent2 = jax.block_until_ready(latent2)
    recon2_ref, latent2_ref = reference_forward(x2, params)
    assert recon2.shape == (B2, d) and latent2.shape == (B2, latent_dim)
    assert jnp.allclose(recon2, recon2_ref, atol=1e-5, rtol=1e-5)
    assert jnp.allclose(latent2, latent2_ref, atol=1e-5, rtol=1e-5)

    print("KERNEL_OK")
</pallas_src>

<mosaic_0001>
module attributes {stable_mosaic.version = 11 : i64} {
  func.func @autoencoder_kernel(%arg0: i32, %arg1: memref<8x32xf32, #tpu.memory_space<vmem>>, %arg2: memref<33x10xf32, #tpu.memory_space<vmem>>, %arg3: memref<11x128xf32, #tpu.memory_space<vmem>>, %arg4: memref<129x10xf32, #tpu.memory_space<vmem>>, %arg5: memref<11x128xf32, #tpu.memory_space<vmem>>, %arg6: memref<8x128xf32, #tpu.memory_space<vmem>>, %arg7: memref<8x128xf32, #tpu.memory_space<vmem>>) attributes {dimension_semantics = [#tpu.dimension_semantics<parallel>], iteration_bounds = array<i64: 1>, scalar_prefetch = 0 : i64, scratch_operands = 0 : i64, tpu.core_type = #tpu.core_type<tc>, window_params = [{transform_indices = @transform_0, window_bounds = array<i64: 8, 32>}, {pipeline_mode = #tpu.pipeline_mode<synchronous>, transform_indices = @transform_1, window_bounds = array<i64: 33, 10>}, {pipeline_mode = #tpu.pipeline_mode<synchronous>, transform_indices = @transform_2, window_bounds = array<i64: 11, 128>}, {pipeline_mode = #tpu.pipeline_mode<synchronous>, transform_indices = @transform_3, window_bounds = array<i64: 129, 10>}, {pipeline_mode = #tpu.pipeline_mode<synchronous>, transform_indices = @transform_4, window_bounds = array<i64: 11, 128>}, {transform_indices = @transform_5, window_bounds = array<i64: 8, 128>}, {transform_indices = @transform_6, window_bounds = array<i64: 8, 128>}]} {
    %c0 = arith.constant 0 : index
    %c0_0 = arith.constant 0 : index
    %0 = vector.load %arg1[%c0, %c0_0] : memref<8x32xf32, #tpu.memory_space<vmem>>, vector<8x32xf32>
    %c0_1 = arith.constant 0 : index
    %c0_2 = arith.constant 0 : index
    %1 = vector.load %arg2[%c0_1, %c0_2] : memref<33x10xf32, #tpu.memory_space<vmem>>, vector<32x10xf32>
    %c32 = arith.constant 32 : index
    %c0_3 = arith.constant 0 : index
    %2 = vector.load %arg2[%c32, %c0_3] : memref<33x10xf32, #tpu.memory_space<vmem>>, vector<1x10xf32>
    %cst = arith.constant dense<0.000000e+00> : vector<8x10xf32>
    %3 = tpu.matmul %0, %1, %cst {dimension_numbers = #tpu.dot_dimension_numbers<[1], [0], [0], [1], [0, 0, 1, 1], [], []>} : vector<8x32xf32>, vector<32x10xf32>, vector<8x10xf32> -> vector<8x10xf32>
    %4 = vector.broadcast %2 : vector<1x10xf32> to vector<8x10xf32>
    %5 = arith.addf %3, %4 : vector<8x10xf32>
    %cst_4 = arith.constant 0.000000e+00 : f32
    %6 = vector.broadcast %cst_4 : f32 to vector<8x10xf32>
    %7 = arith.maximumf %5, %6 : vector<8x10xf32>
    %c0_5 = arith.constant 0 : index
    %c0_6 = arith.constant 0 : index
    %8 = vector.load %arg3[%c0_5, %c0_6] : memref<11x128xf32, #tpu.memory_space<vmem>>, vector<10x128xf32>
    %c10 = arith.constant 10 : index
    %c0_7 = arith.constant 0 : index
    %9 = vector.load %arg3[%c10, %c0_7] : memref<11x128xf32, #tpu.memory_space<vmem>>, vector<1x128xf32>
    %cst_8 = arith.constant dense<0.000000e+00> : vector<8x128xf32>
    %10 = tpu.matmul %7, %8, %cst_8 {dimension_numbers = #tpu.dot_dimension_numbers<[1], [0], [0], [1], [0, 0, 1, 1], [], []>} : vector<8x10xf32>, vector<10x128xf32>, vector<8x128xf32> -> vector<8x128xf32>
    %11 = vector.broadcast %9 : vector<1x128xf32> to vector<8x128xf32>
    %12 = arith.addf %10, %11 : vector<8x128xf32>
    %c0_9 = arith.constant 0 : index
    %c0_10 = arith.constant 0 : index
    %13 = vector.load %arg4[%c0_9, %c0_10] : memref<129x10xf32, #tpu.memory_space<vmem>>, vector<128x10xf32>
    %c128 = arith.constant 128 : index
    %c0_11 = arith.constant 0 : index
    %14 = vector.load %arg4[%c128, %c0_11] : memref<129x10xf32, #tpu.memory_space<vmem>>, vector<1x10xf32>
    %cst_12 = arith.constant dense<0.000000e+00> : vector<8x10xf32>
    %15 = tpu.matmul %12, %13, %cst_12 {dimension_numbers = #tpu.dot_dimension_numbers<[1], [0], [0], [1], [0, 0, 1, 1], [], []>} : vector<8x128xf32>, vector<128x10xf32>, vector<8x10xf32> -> vector<8x10xf32>
    %16 = vector.broadcast %14 : vector<1x10xf32> to vector<8x10xf32>
    %17 = arith.addf %15, %16 : vector<8x10xf32>
    %cst_13 = arith.constant 0.000000e+00 : f32
    %18 = vector.broadcast %cst_13 : f32 to vector<8x10xf32>
    %19 = arith.maximumf %17, %18 : vector<8x10xf32>
    %c0_14 = arith.constant 0 : index
    %c0_15 = arith.constant 0 : index
    %20 = vector.load %arg5[%c0_14, %c0_15] : memref<11x128xf32, #tpu.memory_space<vmem>>, vector<10x128xf32>
    %c10_16 = arith.constant 10 : index
    %c0_17 = arith.constant 0 : index
    %21 = vector.load %arg5[%c10_16, %c0_17] : memref<11x128xf32, #tpu.memory_space<vmem>>, vector<1x128xf32>
    %cst_18 = arith.constant dense<0.000000e+00> : vector<8x128xf32>
    %22 = tpu.matmul %19, %20, %cst_18 {dimension_numbers = #tpu.dot_dimension_numbers<[1], [0], [0], [1], [0, 0, 1, 1], [], []>} : vector<8x10xf32>, vector<10x128xf32>, vector<8x128xf32> -> vector<8x128xf32>
    %23 = vector.broadcast %21 : vector<1x128xf32> to vector<8x128xf32>
    %24 = arith.addf %22, %23 : vector<8x128xf32>
    %c0_19 = arith.constant 0 : index
    %c0_20 = arith.constant 0 : index
    %25 = vector.load %arg7[%c0_19, %c0_20] : memref<8x128xf32, #tpu.memory_space<vmem>>, vector<8x128xf32>
    tpu.vector_store %arg7[%c0_19, %c0_20], %12 {strides = array<i32>} : memref<8x128xf32, #tpu.memory_space<vmem>>, vector<8x128xf32>,
    %c0_21 = arith.constant 0 : index
    %c0_22 = arith.constant 0 : index
    %26 = vector.load %arg6[%c0_21, %c0_22] : memref<8x128xf32, #tpu.memory_space<vmem>>, vector<8x128xf32>
    tpu.vector_store %arg6[%c0_21, %c0_22], %24 {strides = array<i32>} : memref<8x128xf32, #tpu.memory_space<vmem>>, vector<8x128xf32>,
    return
  }
  func.func @transform_0(%arg0: i32) -> (i32, i32) {
    %c0_i32 = arith.constant 0 : i32
    %c0_i32_0 = arith.constant 0 : i32
    return %arg0, %c0_i32 : i32, i32
  }
  func.func @transform_1(%arg0: i32) -> (i32, i32) {
    %c0_i32 = arith.constant 0 : i32
    %c0_i32_0 = arith.constant 0 : i32
    %c0_i32_1 = arith.constant 0 : i32
    return %c0_i32, %c0_i32_0 : i32, i32
  }
  func.func @transform_2(%arg0: i32) -> (i32, i32) {
    %c0_i32 = arith.constant 0 : i32
    %c0_i32_0 = arith.constant 0 : i32
    %c0_i32_1 = arith.constant 0 : i32
    return %c0_i32, %c0_i32_0 : i32, i32
  }
  func.func @transform_3(%arg0: i32) -> (i32, i32) {
    %c0_i32 = arith.constant 0 : i32
    %c0_i32_0 = arith.constant 0 : i32
    %c0_i32_1 = arith.constant 0 : i32
    return %c0_i32, %c0_i32_0 : i32, i32
  }
  func.func @transform_4(%arg0: i32) -> (i32, i32) {
    %c0_i32 = arith.constant 0 : i32
    %c0_i32_0 = arith.constant 0 : i32
    %c0_i32_1 = arith.constant 0 : i32
    return %c0_i32, %c0_i32_0 : i32, i32
  }
  func.func @transform_5(%arg0: i32) -> (i32, i32) {
    %c0_i32 = arith.constant 0 : i32
    %c0_i32_0 = arith.constant 0 : i32
    return %arg0, %c0_i32 : i32, i32
  }
  func.func @transform_6(%arg0: i32) -> (i32, i32) {
    %c0_i32 = arith.constant 0 : i32
    %c0_i32_0 = arith.constant 0 : i32
    return %arg0, %c0_i32 : i32, i32
  }
}

</mosaic_0001>

<bundles_post_ra>
// kernel: tpu_custom_call.1
= control target key start
LH: loop header
LB: loop body
LE: loop exit
PB: predicated region body
PF: predicated region fallthrough
CT: control target
= control target key end

     0   :  { %12 = vsyncpa [#allocation3], 0  ;;  %v544_v1 = vmov 0.0   ;;  %vm545_vm0 = vmmov 0   ;;  %s712_s0 = inlined_call_operand.vmem [shape: f32[8,32], index: 0, kind: input, shape index: {}]   ;;  %s713_s1 = inlined_call_operand.vmem [shape: f32[33,10], index: 1, kind: input, shape index: {}]   ;;  %s714_s2 = inlined_call_operand.vmem [shape: f32[11,128], index: 2, kind: input, shape index: {}]   ;;  %s715_s3 = inlined_call_operand.vmem [shape: f32[129,10], index: 3, kind: input, shape index: {}]   ;;  %s716_s4 = inlined_call_operand.vmem [shape: f32[11,128], index: 4, kind: input, shape index: {}]   ;;  %s717_s5 = inlined_call_operand.hbm [shape: f32[8,128], index: 5, kind: output, shape index: {0}]   ;;  %s718_s6 = inlined_call_operand.hbm [shape: f32[8,128], index: 6, kind: output, shape index: {1}]  }
   0x1   :  { %v28_v0 = vld [vmem:[%s713_s1 + $0x18] sm:$0xff]  ;;  %436 = vmatprep.subr.mxu0 %v544_v1  ;;  %v27_v2 = vld [vmem:[%s713_s1 + $0x10] sm:$0xff]  ;;  %444 = vmatprep.mubr.msk.f32.mxu0 %vm545_vm0, %v544_v1 }
   0x2   :  { %437 = vmatpush3.msra.mxu0 %v28_v0  ;;  %454 = vmatprep.subr.mxu1 %v544_v1 }
   0x3   :  { %13 = vsyncpa [#allocation5], 0  ;;  %438 = vmatprep.subr.mxu0 %v544_v1  ;;  %v26_v3 = vld [vmem:[%s713_s1 + $0x8] sm:$0xff]  ;;  %486 = vmatprep.mubr.msk.f32.mxu1 %vm545_vm0, %v544_v1  ;;  %v25_v4 = vld [vmem:[%s713_s1] sm:$0xff]  ;;  %vm34_vm1 = vcmask 261120   ;;  %vm120_vm2 = vcmask 1041408  }
   0x4   :  { %439 = vmatpush3.msra.mxu0 %v27_v2  ;;  %v24_v5 = vld [vmem:[%s712_s0] sm:$0xff]  ;;  %v110_v6 = vld [vmem:[%s714_s2 + $0x8] sm:$0x3]  ;;  %v209_v8 = vld [vmem:[%s715_s3 + $0x78] sm:$0xff]  ;;  %vm116_vm3 = vcmask 80896   ;;  %s546_s25 = smov [#allocation4]  }
   0x5   :  { %440 = vmatprep.subr.mxu0 %v544_v1  ;;  %v109_v7 = vld [vmem:[%s714_s2] sm:$0xff]  ;;  %v208_v9 = vld [vmem:[%s715_s3 + $0x70] sm:$0xff]  ;;  %455 = vmatpush3.msra.mxu1 %v209_v8  ;;  %v207_v10 = vld [vmem:[%s715_s3 + $0x68] sm:$0xff]  ;;  %s387_s26 = sshll.u32 %s546_s25, 4  ;;  %s388_s26 = int_to_ptr.vmem [resolvable:$true] %s387_s26 }
   0x6   :  { %441 = vmatpush3.msra.mxu0 %v26_v3  ;;  %456 = vmatprep.subr.mxu1 %v544_v1  ;;  %v206_v11 = vld [vmem:[%s715_s3 + $0x60] sm:$0xff]  ;;  %v205_v12 = vld [vmem:[%s715_s3 + $0x58] sm:$0xff]  ;;  %v204_v13 = vld [vmem:[%s715_s3 + $0x50] sm:$0xff]  ;;  %s500_s27 = scalar_lea.vmem %s388_s26, 128  ;;  %p505_p1 = scmp.lt.s32.totalorder %s388_s26, %s388_s26 }
   0x7   :  { %442 = vmatprep.subr.mxu0 %v544_v1  ;;  %457 = vmatpush3.msra.mxu1 %v208_v9  ;;  %v203_v14 = vld [vmem:[%s715_s3 + $0x48] sm:$0xff]  ;;  %v202_v15 = vld [vmem:[%s715_s3 + $0x40] sm:$0xff]  ;;  %v201_v16 = vld [vmem:[%s715_s3 + $0x38] sm:$0xff]  ;;  %p501_p0 = scmp.ne.s32.totalorder %s388_s26, %s500_s27  ;;  %p506_p2 = scmp.lt.s32.totalorder %s500_s27, %s500_s27 }
   0x8   :  { %443 = vmatpush3.msra.mxu0 %v25_v4  ;;  %458 = vmatprep.subr.mxu1 %v544_v1  ;;  %v200_v17 = vld [vmem:[%s715_s3 + $0x30] sm:$0xff]  ;;  %v199_v18 = vld [vmem:[%s715_s3 + $0x28] sm:$0xff]  ;;  %v198_v19 = vld [vmem:[%s715_s3 + $0x20] sm:$0xff] }
   0x9   :  { %445 = vmatmul.mubr.msk.f32.vlgmr.msra.gmra.mxu0 %vm34_vm1, %v24_v5  ;;  %447 = vmatprep.subr.mxu0 %v544_v1  ;;  %v197_v20 = vld [vmem:[%s715_s3 + $0x18] sm:$0xff]  ;;  %v196_v21 = vld [vmem:[%s715_s3 + $0x10] sm:$0xff]  ;;  %v399_v22 = vld [vmem:[%s713_s1 + $0x20] ss:$0 sm:$0xff]  ;;  %p507_p3 = por %p506_p2, %p505_p1 }
   0xa   :  { %451 = vmatprep.mubr.msk.f32.mxu0 %vm545_vm0, %v544_v1  ;;  %448 = vmatpush3.msk.msra.mxu0 %vm120_vm2, %v110_v6  ;;  %v195_v27 = vld [vmem:[%s715_s3 + $0x8] sm:$0xff]  ;;  %v194_v28 = vld [vmem:[%s715_s3] sm:$0xff] }
   0xb   :  { %449 = vmatprep.subr.mxu0 %v544_v1  ;;  %459 = vmatpush3.msra.mxu1 %v207_v10  ;;  %v401_v29 = vld [vmem:[%s714_s2 + $0xa] ss:$0 sm:$0xff]  ;;  %v287_v33 = vld [vmem:[%s716_s4 + $0x8] sm:$0x3]  ;;  %v286_v34 = vld [vmem:[%s716_s4] sm:$0xff]  ;;  %p508_p4 = pnand %p507_p3, %p501_p0 }
   0xc   :  { %450 = vmatpush3.msra.mxu0 %v109_v7  ;;  %460 = vmatprep.subr.mxu1 %v544_v1  ;;  %v404_v35 = vld [vmem:[%s715_s3 + $0x80] ss:$0 sm:$0xff] }
   0xd   :  { %489 = vmatprep.subr.mxu0 %v544_v1  ;;  %461 = vmatpush3.msra.mxu1 %v206_v11 }
   0xe   :  { %462 = vmatprep.subr.mxu1 %v544_v1 }
   0xf   :  { %463 = vmatpush3.msra.mxu1 %v205_v12 }
  0x10   :  { %464 = vmatprep.subr.mxu1 %v544_v1 }
  0x11   :  { %465 = vmatpush3.msra.mxu1 %v204_v13 }
  0x12   :  { %466 = vmatprep.subr.mxu1 %v544_v1 }
  0x13   :  { %467 = vmatpush3.msra.mxu1 %v203_v14 }
  0x14   :  { %468 = vmatprep.subr.mxu1 %v544_v1 }
  0x15   :  { %469 = vmatpush3.msra.mxu1 %v202_v15 }
  0x16   :  { %470 = vmatprep.subr.mxu1 %v544_v1 }
  0x17   :  { %471 = vmatpush3.msra.mxu1 %v201_v16 }
  0x18   :  { %472 = vmatprep.subr.mxu1 %v544_v1 }
  0x19   :  { %473 = vmatpush3.msra.mxu1 %v200_v17 }
  0x1a   :  { %474 = vmatprep.subr.mxu1 %v544_v1 }
  0x1b   :  { %475 = vmatpush3.msra.mxu1 %v199_v18 }
  0x1c   :  { %476 = vmatprep.subr.mxu1 %v544_v1 }
  0x1d   :  { %477 = vmatpush3.msra.mxu1 %v198_v19 }
  0x1e   :  { %478 = vmatprep.subr.mxu1 %v544_v1 }
  0x1f   :  { %479 = vmatpush3.msra.mxu1 %v197_v20 }
  0x20   :  { %480 = vmatprep.subr.mxu1 %v544_v1 }
  0x21   :  { %481 = vmatpush3.msra.mxu1 %v196_v21 }
  0x22   :  { %482 = vmatprep.subr.mxu1 %v544_v1 }
  0x23   :  { %483 = vmatpush3.msra.mxu1 %v195_v27 }
  0x24   :  { %484 = vmatprep.subr.mxu1 %v544_v1 }
  0x25   :  { %485 = vmatpush3.msra.mxu1 %v194_v28 }
  0xc9   :  { %v104_v23 = vpop.f32.mrf.mxu0 }
  0xca   :  { %v105_v24 = vadd.f32 %v399_v22, %v104_v23 }
  0xcb   :  { %v446_v25 = vpop.f32.mrf.mxu0 }
  0xcc   :  { %v108_v26 = vmax.f32 %v105_v24, 0.0 }
  0xce   :  { %452 = vmatmul.mubr.msk.f32.vlgmr.msra.gmra.mxu0 %vm116_vm3, %v108_v26 }
  0xcf   :  { %493 = vmatprep.mubr.msk.f32.mxu0 %vm545_vm0, %v544_v1  ;;  %490 = vmatpush3.msk.msra.mxu0 %vm120_vm2, %v287_v33 }
  0xd0   :  { %491 = vmatprep.subr.mxu0 %v544_v1 }
  0xd1   :  { %492 = vmatpush3.msra.mxu0 %v286_v34 }
 0x18e   :  { %v190_v30 = vpop.f32.mrf.mxu0 }
 0x18f   :  { %v191_v31 = vadd.f32 %v401_v29, %v190_v30 }
 0x190   :  { %v453_v32 = vpop.f32.mrf.mxu0 }
 0x191   :  { %369 = vst [vmem:[#allocation4] sm:$0xff] %v191_v31  ;;  %487 = vmatmul.mubr.f32.vlgmr.msra.gmra.mxu1 %v191_v31 }
 0x251   :  { %v281_v36 = vpop.f32.mrf.mxu1 }
 0x252   :  { %v282_v37 = vadd.f32 %v404_v35, %v281_v36 }
 0x253   :  { %v488_v38 = vpop.f32.mrf.mxu1 }
 0x254   :  { %v285_v39 = vmax.f32 %v282_v37, 0.0 }
 0x256   :  { %494 = vmatmul.mubr.msk.f32.vlgmr.msra.gmra.mxu0 %vm116_vm3, %v285_v39 }
 0x257   :  { %511 = shalt.err (!%p508_p4)
}
 0x258   :  { %390 = dma.vmem_to_hbm [thread:$0]  %s388_s26, 128, %s718_s6, [#allocation5]   ;;  %v405_v40 = vld [vmem:[%s716_s4 + $0xa] ss:$0 sm:$0xff] }
 0x259   :  { %s547_s7 = smov [#allocation2]  }
 0x25a   :  { %s377_s8 = sshll.u32 %s547_s7, 4  ;;  %s378_s8 = int_to_ptr.vmem [resolvable:$true] %s377_s8 }
 0x25b   :  { %s520_s0 = scalar_lea.vmem %s378_s8, 128  ;;  %p525_p6 = scmp.lt.s32.totalorder %s378_s8, %s378_s8 }
 0x25c   :  { %p521_p5 = scmp.ne.s32.totalorder %s378_s8, %s520_s0  ;;  %p526_p7 = scmp.lt.s32.totalorder %s520_s0, %s520_s0 }
 0x25e   :  { %p527_p8 = por %p526_p7, %p525_p6 }
 0x260   :  { %p528_p9 = pnand %p527_p8, %p521_p5 }
 0x316   :  { %v365_v41 = vpop.f32.mrf.mxu0 }
 0x317   :  { %v366_v42 = vadd.f32 %v405_v40, %v365_v41 }
 0x318   :  { %v495_v43 = vpop.f32.mrf.mxu0 }
 0x319   :  { %370 = vst [vmem:[#allocation2] sm:$0xff] %v366_v42 }
 0x31a   :  { %531 = shalt.err (!%p528_p9)
}
 0x31b   :  { %380 = dma.vmem_to_hbm [thread:$0]  %s378_s8, 128, %s717_s5, [#allocation3]  }
 0x31c   :  { %540 = dma.done.wait [#allocation3], 128  }
 0x31d   :  { %541 = vsyncadd [#allocation3], 4294967168 }
 0x31e   :  { %542 = dma.done.wait [#allocation5], 128  }
 0x31f   :  { %543 = vsyncadd [#allocation5], 4294967168 }
 0x320   :  { %397 = vsyncpa [#allocation3], 1 }
 0x321   :  { %398 = vsyncpa [#allocation5], 1 }

</bundles_post_ra>
